<compile_context>
chip_gen: v7x
topology: tpu7x:2x2x1
jax: 0.10.0
libtpu: 0.0.40
codegen_flags: <defaults>
</compile_context>

<pallas_src>
import functools
import math

import jax
import jax.numpy as jnp
from jax.experimental import pallas as pl
from jax.experimental.pallas import tpu as pltpu


def make_sinusoid_pe(max_seq_len: int, d_model: int, dtype=jnp.float32):
    """Deterministic, non-learnable PE buffer, identical to the torch __init__."""
    pos = jnp.arange(max_seq_len, dtype=jnp.float32)[:, None]                  # (L, 1)
    div_term = jnp.exp(
        jnp.arange(0, d_model, 2, dtype=jnp.float32) * (-math.log(10000.0) / d_model)
    )                                                                           # (d_model/2,)
    pe = jnp.zeros((max_seq_len, d_model), jnp.float32)
    pe = pe.at[:, 0::2].set(jnp.sin(pos * div_term))
    pe = pe.at[:, 1::2].set(jnp.cos(pos * div_term))
    return pe.astype(dtype)


# ---------------- kernels ----------------

def _pe_add_kernel(x_ref, pe_ref, o_ref):
    # x_ref: (TB, TN); pe_ref: (1, TN) -> broadcast add over the batch rows.
    o_ref[...] = x_ref[...] + pe_ref[...]


def _pe_add_dropout_kernel(x_ref, pe_ref, u_ref, o_ref, *, p, scale):
    # Inverted dropout: keep iff u >= p (prob 1-p), scale kept values by 1/(1-p).
    # All arithmetic stays in x's dtype (no f32 upcast for bf16 inputs).
    y = x_ref[...] + pe_ref[...]
    keep = u_ref[...] >= jnp.float32(p)
    o_ref[...] = jnp.where(keep, y * jnp.asarray(scale, y.dtype), jnp.zeros((), y.dtype))


# ---------------- tiling heuristic ----------------

def _choose_tiles(B: int, N: int, itemsize: int, target_bytes: int = 2 << 20):
    """Pick (TB, TN) for the flattened (B, N=L*C) layout.

    TB is either the full batch or a multiple of 8 (sublane-aligned).
    TN is a multiple of 128 that divides N, sized so an x/out block is ~2 MiB;
    falls back to the full axis when N is small or not 128-aligned.
    """
    tb = 8 if (B > 8 and B % 8 == 0) else B
    if N % 128 == 0 and tb * N * itemsize > target_bytes:
        tn = 128
        d = 256
        while d <= N:
            if N % d == 0 and tb * d * itemsize <= target_bytes:
                tn = d
            d += 128
    else:
        tn = N
    return tb, tn


# ---------------- wrapper ----------------

def sinusoid_pe_forward(x, pe, *, dropout_p=0.1, train=False, rng_key=None):
    """x: (B, L, C) with C == d_model; pe: (max_seq_len, d_model)."""
    B, L, C = x.shape
    assert C == pe.shape[1], "channel dim must equal d_model"
    assert L <= pe.shape[0], "seq_len exceeds max_seq_len"

    if train and dropout_p >= 1.0:
        return jnp.zeros_like(x)

    dtype = x.dtype
    itemsize = jnp.dtype(dtype).itemsize
    N = L * C

    # Lane-dense flattening: (B, L, C) -> (B, L*C); pe -> (1, L*C).  The
    # broadcast-add over batch is unchanged, but even for small C every store
    # is a full-lane unmasked vst.
    x2 = x.reshape(B, N)
    pe2 = pe[:L].astype(dtype).reshape(1, N)

    tb, tn = _choose_tiles(B, N, itemsize)
    # Batch axis innermost -> the pe block index (0, n) is constant across the
    # inner loop, so the PE tile stays VMEM-resident (no re-DMA per batch step).
    grid = (N // tn, B // tb)

    x_spec = pl.BlockSpec((tb, tn), lambda n, b: (b, n))
    pe_spec = pl.BlockSpec((1, tn), lambda n, b: (0, n))
    out_spec = pl.BlockSpec((tb, tn), lambda n, b: (b, n))

    # Explicit VMEM budget: double-buffered x + out + pe (+ uniform randoms on
    # the train path) plus headroom, capped well under v7x's 64 MiB.
    x_blk = tb * tn * itemsize
    pe_blk = tn * itemsize
    u_blk = tb * tn * 4
    vmem_limit = int(min(48 << 20, max(16 << 20, 2 * (2 * x_blk + pe_blk + u_blk) + (4 << 20))))

    cparams = pltpu.CompilerParams(
        dimension_semantics=("parallel", "parallel"),
        vmem_limit_bytes=vmem_limit,
    )

    if (not train) or dropout_p == 0.0:
        out2 = pl.pallas_call(
            _pe_add_kernel,
            out_shape=jax.ShapeDtypeStruct((B, N), dtype),
            grid=grid,
            in_specs=[x_spec, pe_spec],
            out_specs=out_spec,
            compiler_params=cparams,
        )(x2, pe2)
        return out2.reshape(B, L, C)

    # Training path: dropout mask driven by uniform randoms generated in plain
    # JAX (portable: lowers on TPU and under the CPU interpret harness).
    if rng_key is None:
        rng_key = jax.random.PRNGKey(0)
    u = jax.random.uniform(rng_key, (B, N), dtype=jnp.float32)
    u_spec = pl.BlockSpec((tb, tn), lambda n, b: (b, n))

    p = float(dropout_p)
    kernel = functools.partial(_pe_add_dropout_kernel, p=p, scale=1.0 / (1.0 - p))
    out2 = pl.pallas_call(
        kernel,
        out_shape=jax.ShapeDtypeStruct((B, N), dtype),
        grid=grid,
        in_specs=[x_spec, pe_spec, u_spec],
        out_specs=out_spec,
        compiler_params=cparams,
    )(x2, pe2, u)
    return out2.reshape(B, L, C)


if __name__ == "__main__":
    # Small shapes consistent with the module's NLC forward convention.
    B, L, D_MODEL, MAX_SEQ_LEN = 2, 8, 32, 128

    key = jax.random.PRNGKey(0)
    kx, kd = jax.random.split(key)
    x = jax.random.normal(kx, (B, L, D_MODEL), dtype=jnp.float32)
    pe = make_sinusoid_pe(MAX_SEQ_LEN, D_MODEL)

    # Eval-mode forward (dropout == identity), matches torch module.eval().
    out = jax.block_until_ready(sinusoid_pe_forward(x, pe, dropout_p=0.1, train=False))
    ref = x + pe[:L][None, :, :]
    assert out.shape == (B, L, D_MODEL)
    assert jnp.allclose(out, ref, atol=1e-6), "eval-path mismatch vs reference"

    # Training (dropout) path: every output element must be either 0 (dropped)
    # or (x + pe) / (1 - p) (kept, inverted-dropout scaling).
    out_train = jax.block_until_ready(
        sinusoid_pe_forward(x, pe, dropout_p=0.1, train=True, rng_key=kd)
    )
    assert out_train.shape == (B, L, D_MODEL)
    scaled = ref / (1.0 - 0.1)
    ok = jnp.isclose(out_train, 0.0, atol=1e-6) | jnp.isclose(out_train, scaled, atol=1e-5)
    assert bool(jnp.all(ok)), "train-path values must be 0 or scaled (x + pe)"

    print("KERNEL_OK")
</pallas_src>

<mosaic_0001>
module attributes {stable_mosaic.version = 11 : i64} {
  func.func @_pe_add_kernel(%arg0: i32, %arg1: i32, %arg2: memref<2x256xf32, #tpu.memory_space<vmem>>, %arg3: memref<1x256xf32, #tpu.memory_space<vmem>>, %arg4: memref<2x256xf32, #tpu.memory_space<vmem>>) attributes {dimension_semantics = [#tpu.dimension_semantics<parallel>, #tpu.dimension_semantics<parallel>], iteration_bounds = array<i64: 1, 1>, scalar_prefetch = 0 : i64, scratch_operands = 0 : i64, tpu.core_type = #tpu.core_type<tc>, window_params = [{transform_indices = @transform_0, window_bounds = array<i64: 2, 256>}, {transform_indices = @transform_1, window_bounds = array<i64: 1, 256>}, {transform_indices = @transform_2, window_bounds = array<i64: 2, 256>}]} {
    %c0 = arith.constant 0 : index
    %c0_0 = arith.constant 0 : index
    %0 = vector.load %arg2[%c0, %c0_0] : memref<2x256xf32, #tpu.memory_space<vmem>>, vector<2x256xf32>
    %c0_1 = arith.constant 0 : index
    %c0_2 = arith.constant 0 : index
    %1 = vector.load %arg3[%c0_1, %c0_2] : memref<1x256xf32, #tpu.memory_space<vmem>>, vector<1x256xf32>
    %2 = vector.broadcast %1 : vector<1x256xf32> to vector<2x256xf32>
    %3 = arith.addf %0, %2 : vector<2x256xf32>
    %c0_3 = arith.constant 0 : index
    %c0_4 = arith.constant 0 : index
    %4 = vector.load %arg4[%c0_3, %c0_4] : memref<2x256xf32, #tpu.memory_space<vmem>>, vector<2x256xf32>
    tpu.vector_store %arg4[%c0_3, %c0_4], %3 {strides = array<i32>} : memref<2x256xf32, #tpu.memory_space<vmem>>, vector<2x256xf32>,
    return
  }
  func.func @transform_0(%arg0: i32, %arg1: i32) -> (i32, i32) {
    %c0_i32 = arith.constant 0 : i32
    return %arg1, %arg0 : i32, i32
  }
  func.func @transform_1(%arg0: i32, %arg1: i32) -> (i32, i32) {
    %c0_i32 = arith.constant 0 : i32
    %c0_i32_0 = arith.constant 0 : i32
    return %c0_i32, %arg0 : i32, i32
  }
  func.func @transform_2(%arg0: i32, %arg1: i32) -> (i32, i32) {
    %c0_i32 = arith.constant 0 : i32
    return %arg1, %arg0 : i32, i32
  }
}

</mosaic_0001>

<bundles_post_ra>
// kernel: tpu_custom_call.1
= control target key start
LH: loop header
LB: loop body
LE: loop exit
PB: predicated region body
PF: predicated region fallthrough
CT: control target
= control target key end

     0   :  { %7 = vsyncpa [#allocation3], 0  ;;  %s157_s0 = inlined_call_operand.hbm [shape: f32[2,256], index: 0, kind: input, shape index: {}]   ;;  %s158_s1 = inlined_call_operand.vmem [shape: f32[1,256], index: 1, kind: input, shape index: {}]   ;;  %s159_s2 = inlined_call_operand.hbm [shape: f32[2,256], index: 2, kind: output, shape index: {}]  }
   0x1   :  { %8 = vsyncpa [#allocation4], 0  ;;  %s112_s9 = smov [#allocation2]   ;;  %s64_s13 = scalar_lea.hbm %s157_s0, 64 }
   0x2   :  { %s15_s10 = sshll.u32 %s112_s9, 4  ;;  %p65_p0 = scmp.ne.s32.totalorder %s157_s0, %s64_s13  ;;  %s16_s10 = int_to_ptr.vmem [resolvable:$true] %s15_s10 }
   0x3   :  { %p68_p1 = scmp.lt.u32.totalorder %s64_s13, %s157_s0 }
   0x5   :  { %p70_p2 = pnand %p68_p1, %p65_p0 }
   0x7   :  { %73 = shalt.err (!%p70_p2)
}
   0x8   :  { %s74_s18 = scalar_lea.vmem %s16_s10, 64  ;;  %p79_p4 = scmp.lt.s32.totalorder %s16_s10, %s16_s10 }
   0x9   :  { %p75_p3 = scmp.ne.s32.totalorder %s16_s10, %s74_s18  ;;  %p80_p5 = scmp.lt.s32.totalorder %s74_s18, %s74_s18 }
   0xb   :  { %p81_p6 = por %p80_p5, %p79_p4 }
   0xd   :  { %p82_p7 = pnand %p81_p6, %p75_p3 }
   0xf   :  { %85 = shalt.err (!%p82_p7)
}
  0x10   :  { %18 = dma.hbm_to_vmem [thread:$0]  %s157_s0, 64, %s16_s10, [#allocation3]  }
  0x11   :  { %108 = dma.done.wait [#allocation3], 64  }
  0x12   :  { %109 = vsyncadd [#allocation3], 4294967232  ;;  %v27_v0 = vlaneseq  ;;  %v113_v1 = vmov 1983009808   ;;  %v25_v7 = vld [vmem:[%s158_s1] sm:$0x3] }
  0x13   :  { %v37_v2 = vunpack.c.l.s4 %v113_v1  ;;  %v24_v12 = vld [vmem:[#allocation2] sm:$0xf]  ;;  %s114_s23 = smov [#allocation5]  }
  0x14   :  { %v28_v3 = vshrl.u32 %v27_v0, 7  ;;  %s52_s0 = sshll.u32 %s114_s23, 4  ;;  %s53_s0 = int_to_ptr.vmem [resolvable:$true] %s52_s0 }
  0x15   :  { %v38_v6 = vunpack.c.0.s8 %v37_v2  ;;  %s86_s24 = scalar_lea.vmem %s53_s0, 64  ;;  %p91_p9 = scmp.lt.s32.totalorder %s53_s0, %s53_s0 }
  0x16   :  { %v29_v4 = vsub.s32 0, %v28_v3  ;;  %v33_v5 = vsub.s32 1, %v28_v3  ;;  %p87_p8 = scmp.ne.s32.totalorder %s53_s0, %s86_s24  ;;  %p92_p10 = scmp.lt.s32.totalorder %s86_s24, %s86_s24 }
  0x17   :  { %v41_v10 = vsub.s32 %v38_v6, %v28_v3 }
  0x18   :  { %v30_v8 = vrot.slane %v25_v7, %v29_v4  ;;  %v34_v9 = vrot.slane %v25_v7, %v33_v5  ;;  %p93_p11 = por %p92_p10, %p91_p9 }
  0x1a   :  { %v35_v11 = vcombine.low %v30_v8, %v34_v9  ;;  %p94_p12 = pnand %p93_p11, %p87_p8 }
  0x1c   :  { %v42_v13 = vrot.slane %v35_v11, %v41_v10 }
  0x1e   :  { %v44_v14 = vadd.f32 %v42_v13, %v24_v12 }
  0x20   :  { %45 = vst [vmem:[#allocation5] sm:$0xf] %v44_v14 }
  0x21   :  { %97 = shalt.err (!%p94_p12)
}
  0x22   :  { %s98_s26 = scalar_lea.hbm %s159_s2, 64 }
  0x23   :  { %p99_p13 = scmp.ne.s32.totalorder %s159_s2, %s98_s26  ;;  %p102_p0 = scmp.lt.u32.totalorder %s98_s26, %s159_s2 }
  0x25   :  { %p104_p1 = pnand %p102_p0, %p99_p13 }
  0x27   :  { %107 = shalt.err (!%p104_p1)
}
  0x28   :  { %55 = dma.vmem_to_hbm [thread:$0]  %s53_s0, 64, %s159_s2, [#allocation4]  }
  0x29   :  { %110 = dma.done.wait [#allocation4], 64  }
  0x2a   :  { %111 = vsyncadd [#allocation4], 4294967232 }
  0x2b   :  { %59 = vsyncpa [#allocation3], 1 }
  0x2c   :  { %60 = vsyncpa [#allocation4], 1 }

</bundles_post_ra>
